<compile_context>
chip_gen: v7x
topology: tpu7x:2x2x1
jax: 0.10.0
libtpu: 0.0.40
codegen_flags: <defaults>
</compile_context>

<pallas_src>
import functools

import jax
import jax.numpy as jnp
from jax.experimental import pallas as pl
from jax.experimental.pallas import tpu as pltpu


def _round_up(v, m):
    return ((v + m - 1) // m) * m


def _gap_kernel(x_ref, o_ref, acc_ref, *, hw, thw, mask_tail):
    # x_ref:   (TR, THW) input tile in VMEM
    # o_ref:   (TR, 1)   output tile (resident across the hw grid axis)
    # acc_ref: (TR, 1)   f32 accumulator scratch
    k = pl.program_id(1)

    @pl.when(k == 0)
    def _():
        acc_ref[...] = jnp.zeros_like(acc_ref)

    x = x_ref[...]
    if mask_tail:
        # Last hw tile may extend past H*W: zero out the padded columns.
        valid = hw - k * thw
        col = jax.lax.broadcasted_iota(jnp.int32, x.shape, x.ndim - 1)
        x = jnp.where(col < valid, x, jnp.zeros_like(x))

    # Accumulate in f32 without materializing a full f32 copy of the tile.
    acc_ref[...] += jnp.sum(x, axis=-1, keepdims=True, dtype=jnp.float32)

    @pl.when(k == pl.num_programs(1) - 1)
    def _():
        o_ref[...] = (acc_ref[...] * (1.0 / float(hw))).astype(o_ref.dtype)


def adaptive_avg_pool2d(x, output_size=(1, 1), flatten=False):
    """Global average pool (AdaptiveAvgPool2d with output_size=(1,1)).

    x: (N, C, H, W)  ->  (N, C, 1, 1), or (N, C) if flatten=True.
    """
    if tuple(output_size) != (1, 1):
        # TODO(synk): general adaptive window sizes (output_size != (1,1)) not implemented.
        raise NotImplementedError("Only output_size=(1,1) is supported.")

    n, c, h, w = x.shape
    rows = n * c
    hw = h * w
    x2d = x.reshape(rows, hw)

    dtype_bytes = jnp.dtype(x.dtype).itemsize
    # Conservative budget for the double-buffered input tile pair: fits the
    # v5e 16 MiB scoped-VMEM default with headroom (also fine on v6e/v7x).
    budget = 8 * 1024 * 1024

    min_tr = rows if rows < 8 else 8
    if 2 * min_tr * hw * dtype_bytes <= budget:
        # The whole H*W row fits: tile only the N*C axis.
        thw = hw
        num_hw = 1
        if rows < 8:
            tr = rows  # block equals full array dim -> legal
        else:
            tr_fit = (budget // (2 * hw * dtype_bytes)) // 8 * 8
            tr = max(8, min(tr_fit, 1024, _round_up(rows, 8)))
    else:
        # Large spatial size: also tile H*W (multiples of 128) and accumulate.
        tr = rows if rows < 8 else 8
        thw = (budget // (2 * tr * dtype_bytes)) // 128 * 128
        thw = max(128, min(thw, _round_up(hw, 128)))
        num_hw = pl.cdiv(hw, thw)

    num_row_tiles = pl.cdiv(rows, tr)
    mask_tail = (num_hw > 1) and (hw % thw != 0)

    kernel = functools.partial(_gap_kernel, hw=hw, thw=thw, mask_tail=mask_tail)

    out2d = pl.pallas_call(
        kernel,
        out_shape=jax.ShapeDtypeStruct((rows, 1), x.dtype),
        grid_spec=pltpu.PrefetchScalarGridSpec(
            num_scalar_prefetch=0,
            grid=(num_row_tiles, num_hw),
            in_specs=[pl.BlockSpec((tr, thw), lambda i, k: (i, k))],
            out_specs=pl.BlockSpec((tr, 1), lambda i, k: (i, 0)),
            scratch_shapes=[pltpu.VMEM((tr, 1), jnp.float32)],
        ),
        compiler_params=pltpu.CompilerParams(
            dimension_semantics=("parallel", "arbitrary"),
        ),
    )(x2d)

    if flatten:
        return out2d.reshape(n, c)
    return out2d.reshape(n, c, 1, 1)


if __name__ == "__main__":
    key = jax.random.PRNGKey(0)
    x = jax.random.normal(key, (2, 4, 16, 16), dtype=jnp.float32)

    # default module config: output_size=(1,1), flatten=False
    y = adaptive_avg_pool2d(x, output_size=(1, 1), flatten=False)
    y = jax.block_until_ready(y)
    assert y.shape == (2, 4, 1, 1), y.shape

    # flatten=True variant
    y_flat = adaptive_avg_pool2d(x, output_size=(1, 1), flatten=True)
    y_flat = jax.block_until_ready(y_flat)
    assert y_flat.shape == (2, 4), y_flat.shape

    # correctness check against plain JAX reference
    ref = jnp.mean(x, axis=(2, 3), keepdims=True)
    assert jnp.allclose(y, ref, atol=1e-6, rtol=1e-6)
    assert jnp.allclose(y_flat, ref.reshape(2, 4), atol=1e-6, rtol=1e-6)

    # odd, non-aligned shape (rows < 8, hw not a multiple of 128)
    x2 = jax.random.normal(jax.random.PRNGKey(1), (1, 3, 7, 9), dtype=jnp.float32)
    y2 = jax.block_until_ready(adaptive_avg_pool2d(x2))
    ref2 = jnp.mean(x2, axis=(2, 3), keepdims=True)
    assert y2.shape == (1, 3, 1, 1), y2.shape
    assert jnp.allclose(y2, ref2, atol=1e-6, rtol=1e-6)

    print("KERNEL_OK")
</pallas_src>

<mosaic_0001>
module attributes {stable_mosaic.version = 11 : i64} {
  func.func @_gap_kernel(%arg0: i32, %arg1: i32, %arg2: memref<8x256xf32, #tpu.memory_space<vmem>>, %arg3: memref<8x1xf32, #tpu.memory_space<vmem>>, %arg4: memref<8x1xf32, #tpu.memory_space<vmem>>) attributes {dimension_semantics = [#tpu.dimension_semantics<parallel>, #tpu.dimension_semantics<arbitrary>], iteration_bounds = array<i64: 1, 1>, scalar_prefetch = 0 : i64, scratch_operands = 1 : i64, tpu.core_type = #tpu.core_type<tc>, window_params = [{transform_indices = @transform_0, window_bounds = array<i64: 8, 256>}, {transform_indices = @transform_1, window_bounds = array<i64: 8, 1>}]} {
    %c0_i32 = arith.constant 0 : i32
    %0 = arith.cmpi eq, %arg1, %c0_i32 : i32
    %1 = arith.extui %0 : i1 to i32
    %c0_i32_0 = arith.constant 0 : i32
    %2 = arith.cmpi ne, %1, %c0_i32_0 : i32
    scf.if %2 {
      %cst_8 = arith.constant 0.000000e+00 : f32
      %12 = vector.broadcast %cst_8 : f32 to vector<8x1xf32>
      %c0_9 = arith.constant 0 : index
      %c0_10 = arith.constant 0 : index
      %13 = vector.load %arg4[%c0_9, %c0_10] : memref<8x1xf32, #tpu.memory_space<vmem>>, vector<8x1xf32>
      tpu.vector_store %arg4[%c0_9, %c0_10], %12 {strides = array<i32>} : memref<8x1xf32, #tpu.memory_space<vmem>>, vector<8x1xf32>,
    } else {
    }
    %c0 = arith.constant 0 : index
    %c0_1 = arith.constant 0 : index
    %3 = vector.load %arg2[%c0, %c0_1] : memref<8x256xf32, #tpu.memory_space<vmem>>, vector<8x256xf32>
    %c0_2 = arith.constant 0 : index
    %c0_3 = arith.constant 0 : index
    %4 = vector.load %arg4[%c0_2, %c0_3] : memref<8x1xf32, #tpu.memory_space<vmem>>, vector<8x1xf32>
    %cst = arith.constant dense<0.000000e+00> : vector<8xf32>
    %5 = vector.multi_reduction <add>, %3, %cst [1] : vector<8x256xf32> to vector<8xf32>
    %6 = vector.shape_cast %5 : vector<8xf32> to vector<8x1xf32>
    %7 = arith.addf %4, %6 : vector<8x1xf32>
    %c0_4 = arith.constant 0 : index
    %c0_5 = arith.constant 0 : index
    %8 = vector.load %arg4[%c0_4, %c0_5] : memref<8x1xf32, #tpu.memory_space<vmem>>, vector<8x1xf32>
    tpu.vector_store %arg4[%c0_4, %c0_5], %7 {strides = array<i32>} : memref<8x1xf32, #tpu.memory_space<vmem>>, vector<8x1xf32>,
    %c0_i32_6 = arith.constant 0 : i32
    %9 = arith.cmpi eq, %arg1, %c0_i32_6 : i32
    %10 = arith.extui %9 : i1 to i32
    %c0_i32_7 = arith.constant 0 : i32
    %11 = arith.cmpi ne, %10, %c0_i32_7 : i32
    scf.if %11 {
      %c0_8 = arith.constant 0 : index
      %c0_9 = arith.constant 0 : index
      %12 = vector.load %arg4[%c0_8, %c0_9] : memref<8x1xf32, #tpu.memory_space<vmem>>, vector<8x1xf32>
      %cst_10 = arith.constant 3.906250e-03 : f32
      %13 = vector.broadcast %cst_10 : f32 to vector<8x1xf32>
      %14 = arith.mulf %12, %13 : vector<8x1xf32>
      %c0_11 = arith.constant 0 : index
      %c0_12 = arith.constant 0 : index
      %15 = vector.load %arg3[%c0_11, %c0_12] : memref<8x1xf32, #tpu.memory_space<vmem>>, vector<8x1xf32>
      tpu.vector_store %arg3[%c0_11, %c0_12], %14 {strides = array<i32>} : memref<8x1xf32, #tpu.memory_space<vmem>>, vector<8x1xf32>,
    } else {
    }
    return
  }
  func.func @transform_0(%arg0: i32, %arg1: i32) -> (i32, i32) {
    %c0_i32 = arith.constant 0 : i32
    return %arg0, %arg1 : i32, i32
  }
  func.func @transform_1(%arg0: i32, %arg1: i32) -> (i32, i32) {
    %c0_i32 = arith.constant 0 : i32
    %c0_i32_0 = arith.constant 0 : i32
    return %arg0, %c0_i32 : i32, i32
  }
}

</mosaic_0001>

<bundles_post_ra>
// kernel: tpu_custom_call.1
= control target key start
LH: loop header
LB: loop body
LE: loop exit
PB: predicated region body
PF: predicated region fallthrough
CT: control target
= control target key end

     0   :  { %6 = vsyncpa [#allocation4], 0  ;;  %s72_s6 = smov [#allocation3]   ;;  %s99_s0 = inlined_call_operand.hbm [shape: f32[8,256], index: 0, kind: input, shape index: {}]   ;;  %s100_s1 = inlined_call_operand.vmem [shape: f32[8,1], index: 1, kind: output, shape index: {}]  }
   0x1   :  { %s13_s7 = sshll.u32 %s72_s6, 4  ;;  %s48_s10 = scalar_lea.hbm %s99_s0, 256  ;;  %s14_s7 = int_to_ptr.vmem [resolvable:$true] %s13_s7 }
   0x2   :  { %p49_p0 = scmp.ne.s32.totalorder %s99_s0, %s48_s10  ;;  %p52_p1 = scmp.lt.u32.totalorder %s48_s10, %s99_s0 }
   0x4   :  { %p54_p2 = pnand %p52_p1, %p49_p0 }
   0x6   :  { %57 = shalt.err (!%p54_p2)
}
   0x7   :  { %s58_s15 = scalar_lea.vmem %s14_s7, 256  ;;  %p63_p4 = scmp.lt.s32.totalorder %s14_s7, %s14_s7 }
   0x8   :  { %p59_p3 = scmp.ne.s32.totalorder %s14_s7, %s58_s15  ;;  %p64_p5 = scmp.lt.s32.totalorder %s58_s15, %s58_s15 }
   0xa   :  { %p65_p6 = por %p64_p5, %p63_p4 }
   0xc   :  { %p66_p7 = pnand %p65_p6, %p59_p3 }
   0xe   :  { %69 = shalt.err (!%p66_p7)
}
   0xf   :  { %16 = dma.hbm_to_vmem [thread:$0]  %s99_s0, 256, %s14_s7, [#allocation4]  }
  0x10   :  { %70 = dma.done.wait [#allocation4], 256  }
  0x11   :  { %71 = vsyncadd [#allocation4], 4294967040  ;;  %vm24_vm0 = vcmask 7168   ;;  %v73_v0 = vmov 0.0   ;;  %v26_v1 = vld [vmem:[#allocation3] sm:$0xff]  ;;  %v27_v2 = vld [vmem:[#allocation3 + $0x8] sm:$0xff] }
  0x12   :  { %25 = vst.msk [vmem:[#allocation2] sm:$0xff] %vm24_vm0, %v73_v0  ;;  %v29_v3 = vadd.f32 %v27_v2, %v26_v1 }
  0x14   :  { %30 = vadd.xlane.f32.xlu0 %v29_v3 }
  0x19   :  { %v28_v4 = vld [vmem:[#allocation2] sm:$0xff] }
  0xa1   :  { %v31_v5 = vpop.xlane.xlu0 %30 }
  0xa2   :  { %v32_v6 = vadd.f32 %v31_v5, %v28_v4 }
  0xa4   :  { %34 = vst.msk [vmem:[#allocation2] sm:$0xff] %vm24_vm0, %v32_v6 }
  0xab   :  { %v38_v7 = vld [vmem:[#allocation2] sm:$0xff] }
  0xac   :  { %v39_v8 = vmul.f32 0.00390625, %v38_v7 }
  0xae   :  { %40 = vst.msk [vmem:[%s100_s1] sm:$0xff] %vm24_vm0, %v39_v8 }
  0xaf   :  { %45 = vsyncpa [#allocation4], 1 }

</bundles_post_ra>
